<compile_context>
chip_gen: v5e
topology: v5e:2x2
jax: 0.10.0
libtpu: 0.0.40
codegen_flags: <defaults>
</compile_context>

<pallas_src>
import functools

import jax
import jax.numpy as jnp
from jax.experimental import pallas as pl
from jax.experimental.pallas import tpu as pltpu


def _attention_kernel(x_ref, w_ref, b_ref, o_ref, *, f, fp):
    bt, s, _ = x_ref.shape
    x = x_ref[...]                                     # (BT, S, F), input dtype
    x_mxu = x.astype(jnp.bfloat16).reshape(bt * s, f)  # fold batch into M dim

    # Fused, pre-scaled QKV projection: one wide MXU matmul, f32 accumulation.
    # w_ref is (F, 3*Fp) bf16 with each F->Fp chunk zero-padded on the output
    # dim only, so padded q/k/v columns are exactly zero.
    qkv = jnp.dot(x_mxu, w_ref[...], preferred_element_type=jnp.float32)
    qkv = qkv + b_ref[...]                             # (BT*S, 3*Fp), f32

    q = qkv[:, 0 * fp:1 * fp].astype(jnp.bfloat16).reshape(bt, s, fp)
    k = qkv[:, 1 * fp:2 * fp].astype(jnp.bfloat16).reshape(bt, s, fp)
    v = qkv[:, 2 * fp:3 * fp].astype(jnp.bfloat16).reshape(bt, s, fp)

    # Scores (the 1/sqrt(F) scale is already folded into Wq / bq).
    scores = jnp.einsum('bsf,btf->bst', q, k,
                        preferred_element_type=jnp.float32)

    # Numerically stable softmax in f32, exact division (matches torch.softmax).
    m = jnp.max(scores, axis=-1, keepdims=True)
    e = jnp.exp(scores - m)
    attn = e / jnp.sum(e, axis=-1, keepdims=True)

    # Weighted values on the MXU (bf16 operands, f32 accumulation) + residual.
    y = jnp.einsum('bst,btf->bsf', attn.astype(jnp.bfloat16), v,
                   preferred_element_type=jnp.float32)          # (BT, S, Fp)
    o_ref[...] = (y[..., :f] + x.astype(jnp.float32)).astype(o_ref.dtype)


def _footprint_bytes(bt, s, f, fp, x_item):
    """Rough per-grid-step VMEM footprint (blocks double-buffered + temporaries)."""
    m = bt * s
    blocks = 2 * (m * f * x_item) * 2                  # x + out, double-buffered
    weights = 2 * (f * 3 * fp * 2 + 3 * fp * 4)        # bf16 weight + f32 bias
    temps = (m * f * 2                                  # x cast to bf16
             + m * 3 * fp * 4                           # qkv f32
             + 3 * m * fp * 2                           # q/k/v bf16
             + 2 * m * s * 4 + m * s * 2                # scores/exp f32, attn bf16
             + m * fp * 4)                              # y f32
    return blocks + weights + temps


def _pick_batch_tile(B, S, F, Fp, x_item, budget_bytes):
    """Largest batch tile that (a) keeps >=2 grid steps when B>=2 (so both v7x
    TensorCores get work), (b) keeps the per-step footprint inside the VMEM
    budget, and (c) bounds the (BT, S, S) scores block."""
    cap = max(1, B // 2) if B >= 2 else 1
    best = 1
    for bt in range(1, cap + 1):
        if B % bt:
            continue
        if bt * S > 4096:                               # scores block bound
            continue
        if _footprint_bytes(bt, S, F, Fp, x_item) > budget_bytes:
            continue
        best = bt
    return best


@jax.jit
def attention_layer(x, wq, bq, wk, bk, wv, bv):
    """x: (B, S, F). wq/wk/wv: torch Linear weights (F_out, F_in). b*: (F,)."""
    B, S, F = x.shape
    Fp = max(128, ((F + 127) // 128) * 128)             # lane-aligned chunk width
    scale = 1.0 / (float(F) ** 0.5)

    # Fuse Wq|Wk|Wv into one (F, 3*Fp) weight, pre-transposed so the kernel does
    # x @ W + b.  Only the *output* dim of each chunk is padded (input dim stays
    # F, so x itself never needs padding).  Fold the attention scale into Wq/bq.
    def chunk_w(w, s_):
        return jnp.pad((w * s_).T.astype(jnp.float32), ((0, 0), (0, Fp - F)))

    def chunk_b(b, s_):
        return jnp.pad((b * s_).astype(jnp.float32), (0, Fp - F)).reshape(1, Fp)

    wqkv = jnp.concatenate(
        [chunk_w(wq, scale), chunk_w(wk, 1.0), chunk_w(wv, 1.0)],
        axis=1).astype(jnp.bfloat16)                    # (F, 3*Fp) bf16
    bqkv = jnp.concatenate(
        [chunk_b(bq, scale), chunk_b(bk, 1.0), chunk_b(bv, 1.0)],
        axis=1)                                         # (1, 3*Fp) f32

    x_item = jnp.dtype(x.dtype).itemsize
    budget = 40 * 1024 * 1024                           # headroom inside v7x 64 MiB
    BT = _pick_batch_tile(B, S, F, Fp, x_item, budget)
    fp_bytes = _footprint_bytes(BT, S, F, Fp, x_item)
    vmem_limit = int(min(48 * 1024 * 1024,
                         max(16 * 1024 * 1024, 2 * fp_bytes)))

    kernel = functools.partial(_attention_kernel, f=F, fp=Fp)

    xo_spec = pl.BlockSpec((BT, S, F), lambda b: (b, 0, 0))
    w_spec = pl.BlockSpec((F, 3 * Fp), lambda b: (0, 0))
    b_spec = pl.BlockSpec((1, 3 * Fp), lambda b: (0, 0))

    return pl.pallas_call(
        kernel,
        out_shape=jax.ShapeDtypeStruct((B, S, F), x.dtype),
        grid_spec=pltpu.PrefetchScalarGridSpec(
            num_scalar_prefetch=0,
            grid=(B // BT,),
            in_specs=[xo_spec, w_spec, b_spec],
            out_specs=xo_spec,
        ),
        compiler_params=pltpu.CompilerParams(
            dimension_semantics=("parallel",),
            vmem_limit_bytes=vmem_limit),
    )(x, wqkv, bqkv)


def attention_layer_ref(x, wq, bq, wk, bk, wv, bv):
    """Pure-f32 JAX reference mirroring the PyTorch forward."""
    q = x @ wq.T + bq
    k = x @ wk.T + bk
    v = x @ wv.T + bv
    scores = jnp.einsum('bsf,btf->bst', q, k) / (x.shape[-1] ** 0.5)
    attn = jax.nn.softmax(scores, axis=-1)
    return jnp.einsum('bst,btf->bsf', attn, v) + x


if __name__ == "__main__":
    B, S, F = 2, 8, 32

    key = jax.random.PRNGKey(0)
    kx, kq, kk, kv = jax.random.split(key, 4)

    x = jax.random.normal(kx, (B, S, F), dtype=jnp.float32)

    # Deterministic parameter init (Linear weights ~ small uniform, biases zero
    # per torch.nn.init.zeros_ in the module's __init__).
    bound = 1.0 / (F ** 0.5)
    wq = jax.random.uniform(kq, (F, F), jnp.float32, -bound, bound)
    wk = jax.random.uniform(kk, (F, F), jnp.float32, -bound, bound)
    wv = jax.random.uniform(kv, (F, F), jnp.float32, -bound, bound)
    bq = jnp.zeros((F,), jnp.float32)
    bk = jnp.zeros((F,), jnp.float32)
    bv = jnp.zeros((F,), jnp.float32)

    y = jax.block_until_ready(attention_layer(x, wq, bq, wk, bk, wv, bv))
    y_ref = attention_layer_ref(x, wq, bq, wk, bk, wv, bv)

    assert y.shape == (B, S, F)
    # bf16 MXU operands with f32 accumulation (flash-style): expected deviation
    # from the pure-f32 reference is ~1e-3; 2e-2 gives >10x margin while still
    # catching any structural error.
    max_err = float(jnp.max(jnp.abs(y - y_ref)))
    assert jnp.allclose(y, y_ref, atol=2e-2, rtol=2e-2), max_err

    print("KERNEL_OK")
</pallas_src>

<mosaic_0001>
module attributes {stable_mosaic.version = 11 : i64} {
  func.func @_attention_kernel(%arg0: i32, %arg1: memref<1x8x32xf32, #tpu.memory_space<vmem>>, %arg2: memref<32x384xbf16, #tpu.memory_space<vmem>>, %arg3: memref<1x384xf32, #tpu.memory_space<vmem>>, %arg4: memref<1x8x32xf32, #tpu.memory_space<vmem>>) attributes {dimension_semantics = [#tpu.dimension_semantics<parallel>], iteration_bounds = array<i64: 2>, scalar_prefetch = 0 : i64, scratch_operands = 0 : i64, tpu.core_type = #tpu.core_type<tc>, window_params = [{transform_indices = @transform_0, window_bounds = array<i64: 1, 8, 32>}, {pipeline_mode = #tpu.pipeline_mode<synchronous>, transform_indices = @transform_1, window_bounds = array<i64: 32, 384>}, {pipeline_mode = #tpu.pipeline_mode<synchronous>, transform_indices = @transform_2, window_bounds = array<i64: 1, 384>}, {transform_indices = @transform_3, window_bounds = array<i64: 1, 8, 32>}]} {
    %c0 = arith.constant 0 : index
    %c0_0 = arith.constant 0 : index
    %c0_1 = arith.constant 0 : index
    %0 = vector.load %arg1[%c0, %c0_0, %c0_1] : memref<1x8x32xf32, #tpu.memory_space<vmem>>, vector<1x8x32xf32>
    %1 = arith.truncf %0 : vector<1x8x32xf32> to vector<1x8x32xbf16>
    %2 = vector.shape_cast %1 : vector<1x8x32xbf16> to vector<8x32xbf16>
    %c0_2 = arith.constant 0 : index
    %c0_3 = arith.constant 0 : index
    %3 = vector.load %arg2[%c0_2, %c0_3] : memref<32x384xbf16, #tpu.memory_space<vmem>>, vector<32x384xbf16>
    %cst = arith.constant dense<0.000000e+00> : vector<8x384xf32>
    %4 = tpu.matmul %2, %3, %cst {dimension_numbers = #tpu.dot_dimension_numbers<[1], [0], [0], [1], [0, 0, 1, 1], [], []>} : vector<8x32xbf16>, vector<32x384xbf16>, vector<8x384xf32> -> vector<8x384xf32>
    %c0_4 = arith.constant 0 : index
    %c0_5 = arith.constant 0 : index
    %5 = vector.load %arg3[%c0_4, %c0_5] : memref<1x384xf32, #tpu.memory_space<vmem>>, vector<1x384xf32>
    %6 = vector.broadcast %5 : vector<1x384xf32> to vector<8x384xf32>
    %7 = arith.addf %4, %6 : vector<8x384xf32>
    %8 = vector.extract_strided_slice %7 {offsets = [0, 0], sizes = [8, 128], strides = [1, 1]} : vector<8x384xf32> to vector<8x128xf32>
    %9 = arith.truncf %8 : vector<8x128xf32> to vector<8x128xbf16>
    %10 = vector.shape_cast %9 : vector<8x128xbf16> to vector<1x8x128xbf16>
    %11 = vector.extract_strided_slice %7 {offsets = [0, 128], sizes = [8, 128], strides = [1, 1]} : vector<8x384xf32> to vector<8x128xf32>
    %12 = arith.truncf %11 : vector<8x128xf32> to vector<8x128xbf16>
    %13 = vector.shape_cast %12 : vector<8x128xbf16> to vector<1x8x128xbf16>
    %14 = vector.extract_strided_slice %7 {offsets = [0, 256], sizes = [8, 128], strides = [1, 1]} : vector<8x384xf32> to vector<8x128xf32>
    %15 = arith.truncf %14 : vector<8x128xf32> to vector<8x128xbf16>
    %16 = vector.shape_cast %15 : vector<8x128xbf16> to vector<1x8x128xbf16>
    "tpu.trace_start"() <{level = 10 : i32, message = "bsf,btf->bst"}> : () -> ()
    %cst_6 = arith.constant dense<0.000000e+00> : vector<1x8x8xf32>
    %17 = tpu.matmul %10, %13, %cst_6 {dimension_numbers = #tpu.dot_dimension_numbers<[2], [2], [1], [1], [0, 0, 0, 1, 1, 1], [0], [0]>} : vector<1x8x128xbf16>, vector<1x8x128xbf16>, vector<1x8x8xf32> -> vector<1x8x8xf32>
    "tpu.trace_stop"() : () -> ()
    %cst_7 = arith.constant dense<0xFF800000> : vector<1x8xf32>
    %18 = vector.multi_reduction <maximumf>, %17, %cst_7 [2] : vector<1x8x8xf32> to vector<1x8xf32>
    %19 = vector.shape_cast %18 : vector<1x8xf32> to vector<1x8x1xf32>
    %20 = vector.broadcast %19 : vector<1x8x1xf32> to vector<1x8x8xf32>
    %21 = arith.subf %17, %20 : vector<1x8x8xf32>
    %22 = math.exp %21 : vector<1x8x8xf32>
    %cst_8 = arith.constant dense<0.000000e+00> : vector<1x8xf32>
    %23 = vector.multi_reduction <add>, %22, %cst_8 [2] : vector<1x8x8xf32> to vector<1x8xf32>
    %24 = vector.shape_cast %23 : vector<1x8xf32> to vector<1x8x1xf32>
    %25 = vector.broadcast %24 : vector<1x8x1xf32> to vector<1x8x8xf32>
    %26 = arith.divf %22, %25 : vector<1x8x8xf32>
    %27 = arith.truncf %26 : vector<1x8x8xf32> to vector<1x8x8xbf16>
    "tpu.trace_start"() <{level = 10 : i32, message = "bst,btf->bsf"}> : () -> ()
    %cst_9 = arith.constant dense<0.000000e+00> : vector<1x8x128xf32>
    %28 = tpu.matmul %27, %16, %cst_9 {dimension_numbers = #tpu.dot_dimension_numbers<[2], [1], [1], [2], [0, 0, 0, 1, 1, 2], [0], [0]>} : vector<1x8x8xbf16>, vector<1x8x128xbf16>, vector<1x8x128xf32> -> vector<1x8x128xf32>
    "tpu.trace_stop"() : () -> ()
    %29 = vector.extract_strided_slice %28 {offsets = [0, 0, 0], sizes = [1, 8, 32], strides = [1, 1, 1]} : vector<1x8x128xf32> to vector<1x8x32xf32>
    %30 = arith.addf %29, %0 : vector<1x8x32xf32>
    %c0_10 = arith.constant 0 : index
    %c0_11 = arith.constant 0 : index
    %c0_12 = arith.constant 0 : index
    %31 = vector.load %arg4[%c0_10, %c0_11, %c0_12] : memref<1x8x32xf32, #tpu.memory_space<vmem>>, vector<1x8x32xf32>
    tpu.vector_store %arg4[%c0_10, %c0_11, %c0_12], %30 {strides = array<i32>} : memref<1x8x32xf32, #tpu.memory_space<vmem>>, vector<1x8x32xf32>,
    return
  }
  func.func @transform_0(%arg0: i32) -> (i32, i32, i32) {
    %c0_i32 = arith.constant 0 : i32
    %c0_i32_0 = arith.constant 0 : i32
    %c0_i32_1 = arith.constant 0 : i32
    return %arg0, %c0_i32, %c0_i32_0 : i32, i32, i32
  }
  func.func @transform_1(%arg0: i32) -> (i32, i32) {
    %c0_i32 = arith.constant 0 : i32
    %c0_i32_0 = arith.constant 0 : i32
    %c0_i32_1 = arith.constant 0 : i32
    return %c0_i32, %c0_i32_0 : i32, i32
  }
  func.func @transform_2(%arg0: i32) -> (i32, i32) {
    %c0_i32 = arith.constant 0 : i32
    %c0_i32_0 = arith.constant 0 : i32
    %c0_i32_1 = arith.constant 0 : i32
    return %c0_i32, %c0_i32_0 : i32, i32
  }
  func.func @transform_3(%arg0: i32) -> (i32, i32, i32) {
    %c0_i32 = arith.constant 0 : i32
    %c0_i32_0 = arith.constant 0 : i32
    %c0_i32_1 = arith.constant 0 : i32
    return %arg0, %c0_i32, %c0_i32_0 : i32, i32, i32
  }
}

</mosaic_0001>

<bundles_post_ra>
// kernel: attention_layer.1
= control target key start
LH: loop header
LB: loop body
LE: loop exit
PB: predicated region body
PF: predicated region fallthrough
CT: control target
= control target key end

     0   :  { %8 = vsyncpa [#allocation3], 0  ;;  %s706_s0 = inlined_call_operand.vmem [shape: f32[2,8,32], index: 0, kind: input, shape index: {}]   ;;  %s707_s1 = inlined_call_operand.vmem [shape: bf16[32,384], index: 1, kind: input, shape index: {}]   ;;  %s708_s2 = inlined_call_operand.vmem [shape: f32[1,384], index: 2, kind: input, shape index: {}]   ;;  %s709_s3 = inlined_call_operand.hbm [shape: f32[2,8,32], index: 3, kind: output, shape index: {}]  }
   0x1   :  { %10 = vsyncpa [#allocation3 + $0x1], 0  ;;  %s570_s12 = smov 0   ;;  %s572_s13 = smov 0  }
   0x2   :  { %s574_s14 = smov 0   ;;  %s576_s15 = smov 0  }
   0x3 LB: > { %s591_s16 = sadd.s32 4294967295, %s548_s15   ;;  %s399_s17 = sadd.s32 4294967294, %s548_s15   ;;  %s548_s15 = sphi %s576_s15, %s715_s15   ;;  %s544_s14 = sphi %s574_s14, %s714_s14   ;;  %s540_s13 = sphi %s572_s13, %s713_s13   ;;  %s536_s12 = sphi %s570_s12, %s712_s12  }
   0x4   : > { %s595_s18 = sadd.s32 1, %s548_s15   ;;  %s91_s19 = sadd.s32 1, %s544_s14 }
   0x5   : > { %s88_s20 = ssub.s32 %s548_s15, %s595_s18  ;;  %p101_p0 = scmp.ne.s32.totalorder %s544_s14, %s540_s13 }
   0x6   : > { %p89_p1 = scmp.eq.s32.totalorder %s88_s20, 0  ;;  %p102_p2 = scmp.eq.s32.totalorder %s591_s16, 1 }
   0x7   : > { %p107_p3 = scmp.ne.s32.totalorder %s540_s13, %s536_s12  ;;  %p108_p4 = scmp.eq.s32.totalorder %s399_s17, 1 }
   0x8   : > { %s606_s21 = scalar_select %p89_p1, %s544_s14, %s91_s19  }
   0x9   : > { %p608_p5 = por %p102_p2, %p101_p0  ;;  %p612_p6 = por %p108_p4, %p107_p3 }
   0xa   : > { %p402_p7 = scmp.ge.s32.totalorder %s548_s15, 1  ;;  %p139_p8 = scmp.lt.s32.totalorder %s548_s15, 3 }
   0xc   : > { %p140_p9 = pnand %p402_p7, %p139_p8 }
   0xd   : > { %p162_p10 = scmp.lt.s32.totalorder (!%p140_p9), %s591_s16, 1  ;;  %s159_s10 = sand.u32 (!%p140_p9), 1, %s540_s13  }
   0xe   : > { %143 = sbr.rel (%p140_p9) target bundleno = 699 (0x2bb), region = 32  ;;  %s434_s11 = sshll.u32 (!%p140_p9), %s591_s16, 3 }
   0xf   : > { %s403_s17 = sshll.u32 (!%p140_p9), %s159_s10, 3  ;;  %s335_s24 = scalar_lea.hbm (!%p140_p9), %s709_s3, %s434_s11 }
  0x10   : > { %s161_s25 = scalar_lea.vmem (!%p140_p9), [#allocation2], %s403_s17  ;;  %s339_s27 = sshll.u32 (!%p140_p9), %s335_s24, 4  ;;  %s340_s27 = int_to_ptr.hbm [resolvable:$true] %s339_s27 }
  0x11   : > { %s325_s28 = scalar_lea.sflag (!%p140_p9), [#allocation3], %s159_s10  ;;  %s500_s29 = sshra.s32 (!%p140_p9), %s340_s27, 4  ;;  %s501_s29 = int_to_ptr.hbm [resolvable:$true] %s500_s29 }
  0x12   : > { %s506_s5 = scalar_lea.hbm (!%p140_p9), %s709_s3, 16  ;;  %p507_p0 = scmp.lt.s32.totalorder (!%p140_p9), %s501_s29, %s709_s3 }
  0x13   : > { %v419_v0 = vld [vmem:[%s707_s1 + $0x18] sm:$0xf]  ;;  %v441_v1 = vld [vmem:[%s707_s1 + $0x20] sm:$0xf0]  ;;  %v440_v2 = vld [vmem:[%s707_s1 + $0x1c] sm:$0xf] }
  0x14   : > { %v420_v3 = vor.u32 %v441_v1, %v419_v0  ;;  %v421_v4 = vld [vmem:[%s707_s1 + $0x24] sm:$0xf0]  ;;  %v407_v5 = vld [vmem:[%s707_s1] sm:$0xf]  ;;  %v438_v6 = vld [vmem:[%s707_s1 + $0x8] sm:$0xf0] }
  0x15   : > { %v424_v7 = vor.u32 %v440_v2, %v421_v4  ;;  %v437_v8 = vld [vmem:[%s707_s1 + $0x4] sm:$0xf]  ;;  %v409_v9 = vld [vmem:[%s707_s1 + $0xc] sm:$0xf0]  ;;  %v408_v10 = vor.u32 %v438_v6, %v407_v5  ;;  %s163_s19 = scalar_select %p162_p10, %s591_s16, 1  ;;  %vm217_vm0 = vcmask 261120  }
  0x16   : > { %227 = vmatpush.bf16.msra.mxu0 %v420_v3  ;;  %v412_v11 = vor.u32 %v437_v8, %v409_v9  ;;  %v177_v14 = vld [vmem:[%s708_s2] sm:$0x7]  ;;  %v442_v26 = vld [vmem:[%s707_s1 + $0x28] sm:$0xf0]  ;;  %v415_v27 = vld [vmem:[%s707_s1 + $0x8] sm:$0xf] }
  0x17   : > { %240 = vmatpush.bf16.msra.mxu1 %v424_v7  ;;  %s404_s20 = sshll.u32 %s163_s19, 3  ;;  %v180_v15 = vperm.slane %v177_v14, 1  ;;  %v179_v16 = vperm.slane %v177_v14, 0  ;;  %v427_v25 = vld [vmem:[%s707_s1 + $0x20] sm:$0xf]  ;;  %vm276_vm1 = vcmask 64512  }
  0x18   : > { %s165_s26 = scalar_lea.vmem %s706_s0, %s404_s20  ;;  %v428_v28 = vor.u32 %v442_v26, %v427_v25  ;;  %v439_v29 = vld [vmem:[%s707_s1 + $0x10] sm:$0xf0]  ;;  %v181_v41 = vperm.slane %v177_v14, 2  ;;  %vm305_vm2 = vcmask 1043456   ;;  %s502_s16 = scalar_lea.hbm %s501_s29, 8 }
  0x19   : > { %v647_v12 = vld [vmem:[%s165_s26] sm:$0xff]  ;;  %v416_v30 = vor.u32 %v439_v29, %v415_v27  ;;  %s337_s26 = sshll.u32 %s161_s25, 4  ;;  %p503_p11 = scmp.ne.s32.totalorder %s501_s29, %s502_s16  ;;  %s338_s26 = int_to_ptr.vmem [resolvable:$true] %s337_s26 }
  0x1a   : > { %228 = vmatpush.bf16.msra.mxu0 %v408_v10  ;;  %v168_v13 = vpack.c.bf16 %v647_v12, %v647_v12  ;;  %253 = vmatpush.bf16.msra.mxu2 %v428_v28  ;;  %p508_p1 = scmp.lt.s32.totalorder %s506_s5, %s502_s16 }
  0x1b   : > { %241 = vmatpush.bf16.msra.mxu1 %v412_v11  ;;  %p504_p12 = pnand %p503_p11, %p608_p5 }
  0x1c   : > { %p509_p2 = por %p508_p1, %p507_p0 }
  0x1d   : > { %429 = vmatmul.msk.bf16.vlgmr.msra.gmra.mxu0 %vm217_vm0, %v168_v13  ;;  %p505_p13 = pneg %p504_p12 }
  0x1e   : > { %430 = vmatmul.msk.bf16.vlgmr.msra.gmra.mxu1 %vm217_vm0, %v168_v13  ;;  %254 = vmatpush.bf16.msra.mxu2 %v416_v30 }
  0x1f   : > { %p510_p3 = pnand %p509_p2, %p505_p13 }
  0x21   : > { %431 = vmatmul.msk.bf16.vlgmr.msra.gmra.mxu2 %vm217_vm0, %v168_v13 }
  0x9a   : > { %v230_v17 = vpop.f32.mrf.mxu0 }
  0x9b   : > { %v243_v18 = vpop.f32.mrf.mxu1  ;;  %v231_v21 = vadd.f32 %v230_v17, %v179_v16 }
  0x9c   : > { %v244_v19 = vadd.f32 %v243_v18, %v180_v15 }
  0x9d   : > { %v260_v22 = vpack.c.bf16 %v231_v21, %v231_v21 }
  0x9e   : > { %v261_v20 = vpack.c.bf16 %v244_v19, %v244_v19 }
  0xa0   : > { %270 = vmatpush.bf16.xpose.msra.mxu3 %v261_v20 }
  0xa2   : > { %v232_v23 = vpop.f32.mrf.mxu0 }
  0xa3   : > { %v245_v24 = vpop.f32.mrf.mxu1 }
  0xa4   : > { %v256_v35 = vpop.f32.mrf.mxu2 }
  0xa5   : > { %v257_v42 = vadd.f32 %v256_v35, %v181_v41 }
  0xa7   : > { %271 = vmatmul.bf16.vlgmr.msra.gmra.mxu3 %v260_v22  ;;  %v262_v43 = vpack.c.bf16 %v257_v42, %v257_v42 }
  0xa9   : > { %v307_v44 = vsel %vm305_vm2, %v262_v43, 0 }
  0xaa   : > { %316 = vmatpush.bf16.msrb.mxu0 %v307_v44 }
  0xac   : > { %v258_v38 = vpop.f32.mrf.mxu2 }
 0x12a   : > { %v272_v31 = vpop.f32.mrf.mxu3 }
 0x12b   : > { %v277_v32 = vsel %vm276_vm1, %v272_v31, -inf }
 0x12c   : > { %278 = vmax.xlane.f32.xlu0 %v277_v32 }
 0x132   : > { %v274_v33 = vpop.f32.mrf.mxu3 }
 0x19f   : > { %v279_v34 = vpop.xlane.xlu0 %278 }
 0x1a0   : > { %v280_v36 = vsub.f32 %v272_v31, %v279_v34 }
 0x1a2   : > { %v281_v37 = vmul.f32 1.442695, %v280_v36 }
 0x1a4   : > { %482 = vpow2.f32 %v281_v37 }
 0x1aa   : > { %v483_v39 = vpop.eup %482 }
 0x1ab   : > { %v283_v40 = vsel %vm276_vm1, %v483_v39, 0.0 }
 0x1ac   : > { %284 = vadd.xlane.f32.xlu0 %v283_v40 }
 0x21f   : > { %v285_v45 = vpop.xlane.xlu0 %284 }
 0x220   : > { %484 = vrcp.f32 %v285_v45  ;;  %v297_v49 = vand.u32 2147483648, %v285_v45  ;;  %v295_v51 = vand.u32 2147483647, %v285_v45  ;;  %vm291_vm4 = vweird.f32 %v285_v45 }
 0x222   : > { %v298_v53 = vor.u32 1.1754944e-38, %v297_v49  ;;  %vm296_vm6 = vcmp.eq.f32.partialorder %v295_v51, 8.507059e+37 }
 0x226   : > { %v485_v46 = vpop.eup %484 }
 0x227   : > { %v287_v47 = vmul.f32 %v485_v46, %v285_v45  ;;  %vm292_vm3 = vweird.f32 %v485_v46 }
 0x228   : > { %vm293_vm5 = vmor %vm291_vm4, %vm292_vm3 }
 0x229   : > { %v288_v48 = vsub.f32 1.0, %v287_v47 }
 0x22b   : > { %v289_v50 = vmul.f32 %v485_v46, %v288_v48 }
 0x22d   : > { %v290_v52 = vadd.f32 %v485_v46, %v289_v50 }
 0x22f   : > { %v294_v54 = vsel %vm293_vm5, %v485_v46, %v290_v52 }
 0x230   : > { %v299_v55 = vsel %vm296_vm6, %v298_v53, %v294_v54 }
 0x231   : > { %v300_v56 = vmul.f32 %v483_v39, %v299_v55 }
 0x233   : > { %v301_v57 = vpack.c.bf16 %v300_v56, %v300_v56 }
 0x235   : > { %432 = vmatmul.msk.bf16.vlgmr.msrb.gmra.mxu0 %vm276_vm1, %v301_v57 }
 0x2b2   : > { %v318_v58 = vpop.f32.mrf.mxu0 }
 0x2b3   : > { %v322_v59 = vadd.f32 %v318_v58, %v647_v12 }
 0x2b5   : > { %323 = vst.msk [vmem:[%s161_s25] sm:$0xff] %vm217_vm0, %v322_v59 }
 0x2b6   : > { %513 = shalt.err (!%p510_p3)
}
 0x2b7   : > { %443 = dma.vmem_to_hbm [thread:$0]  (%p608_p5), %s338_s26, 128, %s340_s27, %s325_s28  }
 0x2ba   : > { %v320_v60 = vpop.f32.mrf.mxu0 }
 0x2bb PF: > { %p449_p4 = scmp.ge.s32.totalorder %s548_s15, 2  ;;  %s351_s8 = sand.u32 1, %s536_s12  }
 0x2bc   : > { %s352_s9 = scalar_lea.sflag [#allocation3], %s351_s8 }
 0x2bd   : > { %p446_p7 = pnand %p449_p4, %p612_p6 }
 0x2bf   : > { %p447_p8 = pneg %p446_p7 }
 0x2c1   : > { %531 = dma.done.wait (%p447_p8), %s352_s9, 128  }
 0x2c2   : > { %533 = vsyncadd (%p447_p8), %s352_s9, 4294967168  ;;  %p13_p9 = scmp.ge.s32.totalorder %s595_s18, 4   ;;  %s712_s12 = smov %s540_s13 }
 0x2c3   : > { %s713_s13 = smov %s544_s14  ;;  %s714_s14 = smov %s606_s21 }
 0x2c4   : > { %s715_s15 = smov %s595_s18  ;;  %15 = sbr.rel (!%p13_p9) target bundleno = 3 (0x3), region = 67 }
 0x2c9   :  { %358 = vsyncpa [#allocation3], 1 }
 0x2ca   :  { %360 = vsyncpa [#allocation3 + $0x1], 1 }

</bundles_post_ra>
